<compile_context>
chip_gen: v7x
topology: tpu7x:2x2x1
jax: 0.10.0
libtpu: 0.0.40
codegen_flags: <defaults>
</compile_context>

<pallas_src>
import math

import jax
import jax.numpy as jnp
from jax import lax
from jax.experimental import pallas as pl
from jax.experimental.pallas import tpu as pltpu

# ----- criterion hyper-parameters (opt.loss_triplet_margin, opt.poisoned_rate,
#       opt.plambda1, opt.plambda2) — deterministic, baked into the kernel -----
MARGIN = 0.2
POISONED_RATE = 0.25
PLAMBDA1 = 1.0
PLAMBDA2 = 0.5

_OUT_SUB, _OUT_LANE = 8, 128   # aligned, lane-dense per-tile partial-sum block


def _round_up(x, m):
    return (x + m - 1) // m * m


def _poison_triplet_kernel(a_ref, p_ref, n_ref, ap_ref, c_ref, csq_ref,
                           vmask_ref, pmask_ref, out_ref):
    """One tile of TT triplets -> one partial sum, broadcast into an aligned
    (1, 8, 128) output block (the wrapper reads element [0, 0])."""
    f32 = jnp.float32

    a = a_ref[...]            # (TT, D)  compute dtype (bf16 by default)
    p = p_ref[...]            # (TT, D)
    n = n_ref[...]            # (TT, D)
    ap = ap_ref[...]          # (TT, D)  poisoned-anchor embeddings
    c = c_ref[...]            # (C, D)   class centers
    c_sq = csq_ref[...]       # (1, C)   f32 precomputed ||center||^2
    vmask = vmask_ref[...]    # (TT, 1)  1.0 for real rows, 0.0 for padding
    pmask = pmask_ref[...]    # (TT, 1)  1.0 for (real) poisoned rows, else 0.0

    a32, p32, n32, ap32 = (x.astype(f32) for x in (a, p, n, ap))

    # ---- clean triplet loss: relu(||a-p||^2 - ||a-n||^2 + margin) -----------
    # single fused D-wide reduction.
    dap = a32 - p32
    dan = a32 - n32
    delta1 = jnp.sum(dap * dap - dan * dan, axis=1, keepdims=True)      # (TT, 1)
    loss1_vec = jnp.maximum(delta1 + MARGIN, 0.0) * vmask

    # ---- farthest class center per anchor ------------------------------------
    # argmax_c ||a - c||^2 == argmax_c (||c||^2 - 2 a.c): ||a||^2 is constant
    # per row and sqrt is monotone, so neither is computed.
    ac = lax.dot_general(a, c, (((1,), (1,)), ((), ())),
                         preferred_element_type=f32)                    # (TT, C) MXU
    rank = c_sq - 2.0 * ac                                              # (TT, C)
    tt, cc = rank.shape
    max_val = jnp.max(rank, axis=1, keepdims=True)                      # (TT, 1)
    col = lax.broadcasted_iota(jnp.int32, (tt, cc), 1)                  # (TT, C)
    far_idx = jnp.min(jnp.where(rank >= max_val, col, cc),
                      axis=1, keepdims=True)                            # first max (torch.max)
    onehot = (col == far_idx).astype(f32)                               # (TT, C)

    # ---- poisoned triplet loss ------------------------------------------------
    # relu(||ap - far||^2 - ||ap - pos||^2 + margin); ||ap||^2 cancels, and the
    # farthest-center distance is picked out of the ap->centers distance matrix
    # instead of materializing the gathered center embeddings.
    apc = lax.dot_general(ap, c, (((1,), (1,)), ((), ())),
                          preferred_element_type=f32)                   # (TT, C) MXU
    term_far = jnp.sum(onehot * (c_sq - 2.0 * apc),
                       axis=1, keepdims=True)                           # (TT, 1)
    term_pp = jnp.sum(p32 * (p32 - 2.0 * ap32),
                      axis=1, keepdims=True)                            # (TT, 1)
    loss2_vec = jnp.maximum(term_far - term_pp + MARGIN, 0.0) * pmask

    # ---- single fused per-tile reduction --------------------------------------
    contrib = PLAMBDA1 * loss1_vec + PLAMBDA2 * loss2_vec               # (TT, 1)
    partial = jnp.sum(contrib, axis=0, keepdims=True)                   # (1, 1)
    out_ref[...] = jnp.broadcast_to(partial.reshape(1, 1, 1), out_ref.shape)


def poison_triplet_loss(batch, triplets, anchor_p, centers, poison_mask,
                        *, compute_dtype=jnp.bfloat16, block_t=512):
    """batch: [B, D], triplets: [T, 3] int32, anchor_p: [T, D],
    centers: [C, D], poison_mask: [T] (1.0 iff triplet is poisoned) -> scalar."""
    T = int(triplets.shape[0])
    D = int(batch.shape[1])
    C = int(centers.shape[0])

    # TODO(synk): for very large T*D the three host-side gathers could be moved
    # in-kernel (scalar-prefetched triplet indices + per-row DMA from `batch`)
    # to avoid one HBM round-trip; at these shapes jnp.take is cheaper.
    anchors = jnp.take(batch, triplets[:, 0], axis=0).astype(compute_dtype)
    positives = jnp.take(batch, triplets[:, 1], axis=0).astype(compute_dtype)
    negatives = jnp.take(batch, triplets[:, 2], axis=0).astype(compute_dtype)
    anchor_p = anchor_p.astype(compute_dtype)
    centers_c = centers.astype(compute_dtype)

    # ||c||^2 precomputed once in f32 (tiny) so the kernel never transposes it.
    c_sq = jnp.sum(centers_c.astype(jnp.float32) ** 2, axis=1).reshape(1, C)

    # T-tiling: multiples of 8 sublanes; default tile (<=512 rows) keeps the
    # 4 double-buffered (TT, D) input blocks well under the scoped-VMEM default
    # on all chips (incl. v7x's smaller physical VMEM).
    tt = min(block_t, _round_up(T, 8))
    t_pad = _round_up(T, tt)
    num_tiles = t_pad // tt

    def pad_rows(x):
        return jnp.pad(x, ((0, t_pad - x.shape[0]), (0, 0)))

    anchors = pad_rows(anchors)
    positives = pad_rows(positives)
    negatives = pad_rows(negatives)
    anchor_p = pad_rows(anchor_p)
    vmask = pad_rows(jnp.ones((T, 1), jnp.float32))
    pmask = pad_rows(poison_mask.reshape(T, 1).astype(jnp.float32))

    itemsize = jnp.dtype(compute_dtype).itemsize
    cost = pl.CostEstimate(
        flops=4 * t_pad * D * C + 14 * t_pad * D + 10 * t_pad * C,
        transcendentals=0,
        bytes_accessed=(4 * t_pad * D + C * D) * itemsize
                       + 2 * t_pad * 4 + num_tiles * _OUT_SUB * _OUT_LANE * 4)

    row_spec = pl.BlockSpec((tt, D), lambda i: (i, 0))
    mask_spec = pl.BlockSpec((tt, 1), lambda i: (i, 0))
    full_c_spec = pl.BlockSpec((C, D), lambda i: (0, 0))
    full_csq_spec = pl.BlockSpec((1, C), lambda i: (0, 0))

    partials = pl.pallas_call(
        _poison_triplet_kernel,
        out_shape=jax.ShapeDtypeStruct((num_tiles, _OUT_SUB, _OUT_LANE),
                                       jnp.float32),
        grid_spec=pltpu.PrefetchScalarGridSpec(
            num_scalar_prefetch=0,
            grid=(num_tiles,),
            in_specs=[row_spec, row_spec, row_spec, row_spec,
                      full_c_spec, full_csq_spec, mask_spec, mask_spec],
            out_specs=pl.BlockSpec((1, _OUT_SUB, _OUT_LANE),
                                   lambda i: (i, 0, 0)),
        ),
        compiler_params=pltpu.CompilerParams(
            # per-tile independent partial sums -> both TensorCores on v7x
            dimension_semantics=("parallel",)),
        cost_estimate=cost,
    )(anchors, positives, negatives, anchor_p, centers_c, c_sq, vmask, pmask)

    # both sums are divided by len(loss1_list) == T, exactly as in PyTorch.
    return jnp.sum(partials[:, 0, 0]) / T


def _reference(batch, triplets, anchor_p, centers, poison_mask):
    """Pure-JAX mirror of the PyTorch forward (for a silent sanity check)."""
    a = batch[triplets[:, 0]]
    p = batch[triplets[:, 1]]
    n = batch[triplets[:, 2]]
    T = triplets.shape[0]
    l1 = jnp.maximum(jnp.sum((a - p) ** 2, 1) - jnp.sum((a - n) ** 2, 1) + MARGIN, 0.0)
    dis = jnp.sqrt(jnp.sum((a[:, None, :] - centers[None, :, :]) ** 2, -1))
    far = centers[jnp.argmax(dis, axis=1)]
    l2 = jnp.maximum(jnp.sum((anchor_p - far) ** 2, 1)
                     - jnp.sum((anchor_p - p) ** 2, 1) + MARGIN, 0.0) * poison_mask
    return PLAMBDA1 * jnp.sum(l1) / T + PLAMBDA2 * jnp.sum(l2) / T


if __name__ == "__main__":
    B, D, C, T = 12, 32, 4, 8  # batch rows, embed dim, #class centers, #triplets
    key = jax.random.PRNGKey(0)
    k1, k2, k3, k4 = jax.random.split(key, 4)

    batch = jax.random.normal(k1, (B, D), dtype=jnp.float32)      # embeddings
    centers = jax.random.normal(k2, (C, D), dtype=jnp.float32)    # label_center_dict stacked

    # deterministic stand-in for the external batchminer(batch, labels)
    triplets = jnp.array([[(3 * t) % B, (3 * t + 1) % B, (3 * t + 2) % B]
                          for t in range(T)], dtype=jnp.int32)

    # deterministic stand-in for random.shuffle poison selection: first pn triplets
    pn = math.ceil(POISONED_RATE * T)
    poison_mask = jnp.array([1.0 if t < pn else 0.0 for t in range(T)],
                            dtype=jnp.float32)

    # TODO(synk): get_trigger_input(...) + model(...) are external data/network
    # modules; simulate the poisoned-anchor embeddings with a deterministic
    # random projection instead of a real backbone forward pass.
    trigger_feat = jax.random.normal(k3, (T, 64), dtype=jnp.float32)
    w_model = jax.random.normal(k4, (64, D), dtype=jnp.float32) / jnp.sqrt(64.0)
    anchor_p = jnp.tanh(trigger_feat @ w_model)

    # kernel runs on bf16 embeddings with f32 accumulation; compare against an
    # f32 reference evaluated on the same bf16-rounded values.
    q = lambda x: x.astype(jnp.bfloat16).astype(jnp.float32)
    batch_q, centers_q, anchor_p_q = q(batch), q(centers), q(anchor_p)

    loss = poison_triplet_loss(batch_q, triplets, anchor_p_q, centers_q, poison_mask)
    loss = jax.block_until_ready(loss)

    ref = _reference(batch_q, triplets, anchor_p_q, centers_q, poison_mask)
    assert jnp.isfinite(loss), "kernel produced non-finite loss"
    assert jnp.allclose(loss, ref, rtol=5e-3, atol=5e-3), (loss, ref)

    print("KERNEL_OK")
</pallas_src>

<mosaic_0001>
module attributes {stable_mosaic.version = 11 : i64} {
  func.func @_poison_triplet_kernel(%arg0: i32, %arg1: memref<8x32xbf16, #tpu.memory_space<vmem>>, %arg2: memref<8x32xbf16, #tpu.memory_space<vmem>>, %arg3: memref<8x32xbf16, #tpu.memory_space<vmem>>, %arg4: memref<8x32xbf16, #tpu.memory_space<vmem>>, %arg5: memref<4x32xbf16, #tpu.memory_space<vmem>>, %arg6: memref<1x4xf32, #tpu.memory_space<vmem>>, %arg7: memref<8x1xf32, #tpu.memory_space<vmem>>, %arg8: memref<8x1xf32, #tpu.memory_space<vmem>>, %arg9: memref<1x8x128xf32, #tpu.memory_space<vmem>>) attributes {dimension_semantics = [#tpu.dimension_semantics<parallel>], iteration_bounds = array<i64: 1>, scalar_prefetch = 0 : i64, scratch_operands = 0 : i64, tpu.core_type = #tpu.core_type<tc>, window_params = [{transform_indices = @transform_0, window_bounds = array<i64: 8, 32>}, {transform_indices = @transform_1, window_bounds = array<i64: 8, 32>}, {transform_indices = @transform_2, window_bounds = array<i64: 8, 32>}, {transform_indices = @transform_3, window_bounds = array<i64: 8, 32>}, {pipeline_mode = #tpu.pipeline_mode<synchronous>, transform_indices = @transform_4, window_bounds = array<i64: 4, 32>}, {pipeline_mode = #tpu.pipeline_mode<synchronous>, transform_indices = @transform_5, window_bounds = array<i64: 1, 4>}, {transform_indices = @transform_6, window_bounds = array<i64: 8, 1>}, {transform_indices = @transform_7, window_bounds = array<i64: 8, 1>}, {transform_indices = @transform_8, window_bounds = array<i64: 1, 8, 128>}]} {
    %c0 = arith.constant 0 : index
    %c0_0 = arith.constant 0 : index
    %0 = vector.load %arg1[%c0, %c0_0] : memref<8x32xbf16, #tpu.memory_space<vmem>>, vector<8x32xbf16>
    %c0_1 = arith.constant 0 : index
    %c0_2 = arith.constant 0 : index
    %1 = vector.load %arg2[%c0_1, %c0_2] : memref<8x32xbf16, #tpu.memory_space<vmem>>, vector<8x32xbf16>
    %c0_3 = arith.constant 0 : index
    %c0_4 = arith.constant 0 : index
    %2 = vector.load %arg3[%c0_3, %c0_4] : memref<8x32xbf16, #tpu.memory_space<vmem>>, vector<8x32xbf16>
    %c0_5 = arith.constant 0 : index
    %c0_6 = arith.constant 0 : index
    %3 = vector.load %arg4[%c0_5, %c0_6] : memref<8x32xbf16, #tpu.memory_space<vmem>>, vector<8x32xbf16>
    %c0_7 = arith.constant 0 : index
    %c0_8 = arith.constant 0 : index
    %4 = vector.load %arg5[%c0_7, %c0_8] : memref<4x32xbf16, #tpu.memory_space<vmem>>, vector<4x32xbf16>
    %c0_9 = arith.constant 0 : index
    %c0_10 = arith.constant 0 : index
    %5 = vector.load %arg6[%c0_9, %c0_10] : memref<1x4xf32, #tpu.memory_space<vmem>>, vector<1x4xf32>
    %c0_11 = arith.constant 0 : index
    %c0_12 = arith.constant 0 : index
    %6 = vector.load %arg7[%c0_11, %c0_12] : memref<8x1xf32, #tpu.memory_space<vmem>>, vector<8x1xf32>
    %c0_13 = arith.constant 0 : index
    %c0_14 = arith.constant 0 : index
    %7 = vector.load %arg8[%c0_13, %c0_14] : memref<8x1xf32, #tpu.memory_space<vmem>>, vector<8x1xf32>
    %8 = arith.extf %0 : vector<8x32xbf16> to vector<8x32xf32>
    %9 = arith.extf %1 : vector<8x32xbf16> to vector<8x32xf32>
    %10 = arith.extf %2 : vector<8x32xbf16> to vector<8x32xf32>
    %11 = arith.extf %3 : vector<8x32xbf16> to vector<8x32xf32>
    %12 = arith.subf %8, %9 : vector<8x32xf32>
    %13 = arith.subf %8, %10 : vector<8x32xf32>
    %14 = arith.mulf %12, %12 : vector<8x32xf32>
    %15 = arith.mulf %13, %13 : vector<8x32xf32>
    %16 = arith.subf %14, %15 : vector<8x32xf32>
    %cst = arith.constant dense<0.000000e+00> : vector<8xf32>
    %17 = vector.multi_reduction <add>, %16, %cst [1] : vector<8x32xf32> to vector<8xf32>
    %18 = vector.shape_cast %17 : vector<8xf32> to vector<8x1xf32>
    %cst_15 = arith.constant 2.000000e-01 : f32
    %19 = vector.broadcast %cst_15 : f32 to vector<8x1xf32>
    %20 = arith.addf %18, %19 : vector<8x1xf32>
    %cst_16 = arith.constant 0.000000e+00 : f32
    %21 = vector.broadcast %cst_16 : f32 to vector<8x1xf32>
    %22 = arith.maximumf %20, %21 : vector<8x1xf32>
    %23 = arith.mulf %22, %6 : vector<8x1xf32>
    %cst_17 = arith.constant dense<0.000000e+00> : vector<8x4xf32>
    %24 = tpu.matmul %0, %4, %cst_17 {dimension_numbers = #tpu.dot_dimension_numbers<[1], [1], [0], [0], [0, 0, 1, 0], [], []>} : vector<8x32xbf16>, vector<4x32xbf16>, vector<8x4xf32> -> vector<8x4xf32>
    %cst_18 = arith.constant 2.000000e+00 : f32
    %25 = vector.broadcast %cst_18 : f32 to vector<8x4xf32>
    %26 = arith.mulf %25, %24 : vector<8x4xf32>
    %27 = vector.broadcast %5 : vector<1x4xf32> to vector<8x4xf32>
    %28 = arith.subf %27, %26 : vector<8x4xf32>
    %cst_19 = arith.constant dense<0xFF800000> : vector<8xf32>
    %29 = vector.multi_reduction <maximumf>, %28, %cst_19 [1] : vector<8x4xf32> to vector<8xf32>
    %30 = vector.shape_cast %29 : vector<8xf32> to vector<8x1xf32>
    %31 = tpu.iota {dimensions = array<i32: 1>} : vector<8x4xi32>
    %32 = vector.broadcast %30 : vector<8x1xf32> to vector<8x4xf32>
    %33 = arith.cmpf oge, %28, %32 : vector<8x4xf32>
    %c4_i32 = arith.constant 4 : i32
    %34 = vector.broadcast %c4_i32 : i32 to vector<8x4xi32>
    %35 = arith.select %33, %31, %34 : vector<8x4xi1>, vector<8x4xi32>
    %cst_20 = arith.constant dense<2147483647> : vector<8xi32>
    %36 = vector.multi_reduction <minsi>, %35, %cst_20 [1] : vector<8x4xi32> to vector<8xi32>
    %37 = vector.shape_cast %36 : vector<8xi32> to vector<8x1xi32>
    %38 = vector.broadcast %37 : vector<8x1xi32> to vector<8x4xi32>
    %39 = arith.cmpi eq, %31, %38 : vector<8x4xi32>
    %40 = arith.extui %39 : vector<8x4xi1> to vector<8x4xi32>
    %41 = arith.sitofp %40 : vector<8x4xi32> to vector<8x4xf32>
    %cst_21 = arith.constant dense<0.000000e+00> : vector<8x4xf32>
    %42 = tpu.matmul %3, %4, %cst_21 {dimension_numbers = #tpu.dot_dimension_numbers<[1], [1], [0], [0], [0, 0, 1, 0], [], []>} : vector<8x32xbf16>, vector<4x32xbf16>, vector<8x4xf32> -> vector<8x4xf32>
    %cst_22 = arith.constant 2.000000e+00 : f32
    %43 = vector.broadcast %cst_22 : f32 to vector<8x4xf32>
    %44 = arith.mulf %43, %42 : vector<8x4xf32>
    %45 = vector.broadcast %5 : vector<1x4xf32> to vector<8x4xf32>
    %46 = arith.subf %45, %44 : vector<8x4xf32>
    %47 = arith.mulf %41, %46 : vector<8x4xf32>
    %cst_23 = arith.constant dense<0.000000e+00> : vector<8xf32>
    %48 = vector.multi_reduction <add>, %47, %cst_23 [1] : vector<8x4xf32> to vector<8xf32>
    %49 = vector.shape_cast %48 : vector<8xf32> to vector<8x1xf32>
    %cst_24 = arith.constant 2.000000e+00 : f32
    %50 = vector.broadcast %cst_24 : f32 to vector<8x32xf32>
    %51 = arith.mulf %50, %11 : vector<8x32xf32>
    %52 = arith.subf %9, %51 : vector<8x32xf32>
    %53 = arith.mulf %9, %52 : vector<8x32xf32>
    %cst_25 = arith.constant dense<0.000000e+00> : vector<8xf32>
    %54 = vector.multi_reduction <add>, %53, %cst_25 [1] : vector<8x32xf32> to vector<8xf32>
    %55 = vector.shape_cast %54 : vector<8xf32> to vector<8x1xf32>
    %56 = arith.subf %49, %55 : vector<8x1xf32>
    %cst_26 = arith.constant 2.000000e-01 : f32
    %57 = vector.broadcast %cst_26 : f32 to vector<8x1xf32>
    %58 = arith.addf %56, %57 : vector<8x1xf32>
    %cst_27 = arith.constant 0.000000e+00 : f32
    %59 = vector.broadcast %cst_27 : f32 to vector<8x1xf32>
    %60 = arith.maximumf %58, %59 : vector<8x1xf32>
    %61 = arith.mulf %60, %7 : vector<8x1xf32>
    %cst_28 = arith.constant 1.000000e+00 : f32
    %62 = vector.broadcast %cst_28 : f32 to vector<8x1xf32>
    %63 = arith.mulf %62, %23 : vector<8x1xf32>
    %cst_29 = arith.constant 5.000000e-01 : f32
    %64 = vector.broadcast %cst_29 : f32 to vector<8x1xf32>
    %65 = arith.mulf %64, %61 : vector<8x1xf32>
    %66 = arith.addf %63, %65 : vector<8x1xf32>
    %cst_30 = arith.constant dense<0.000000e+00> : vector<1xf32>
    %67 = vector.multi_reduction <add>, %66, %cst_30 [0] : vector<8x1xf32> to vector<1xf32>
    %68 = vector.shape_cast %67 : vector<1xf32> to vector<1x1xf32>
    %69 = vector.shape_cast %68 : vector<1x1xf32> to vector<1x1x1xf32>
    %70 = vector.shape_cast %69 : vector<1x1x1xf32> to vector<1x1x1xf32>
    %71 = vector.broadcast %70 : vector<1x1x1xf32> to vector<1x8x128xf32>
    %c0_31 = arith.constant 0 : index
    %c0_32 = arith.constant 0 : index
    %c0_33 = arith.constant 0 : index
    %72 = vector.load %arg9[%c0_31, %c0_32, %c0_33] : memref<1x8x128xf32, #tpu.memory_space<vmem>>, vector<1x8x128xf32>
    tpu.vector_store %arg9[%c0_31, %c0_32, %c0_33], %71 {strides = array<i32>} : memref<1x8x128xf32, #tpu.memory_space<vmem>>, vector<1x8x128xf32>,
    return
  }
  func.func @transform_0(%arg0: i32) -> (i32, i32) {
    %c0_i32 = arith.constant 0 : i32
    %c0_i32_0 = arith.constant 0 : i32
    return %arg0, %c0_i32 : i32, i32
  }
  func.func @transform_1(%arg0: i32) -> (i32, i32) {
    %c0_i32 = arith.constant 0 : i32
    %c0_i32_0 = arith.constant 0 : i32
    return %arg0, %c0_i32 : i32, i32
  }
  func.func @transform_2(%arg0: i32) -> (i32, i32) {
    %c0_i32 = arith.constant 0 : i32
    %c0_i32_0 = arith.constant 0 : i32
    return %arg0, %c0_i32 : i32, i32
  }
  func.func @transform_3(%arg0: i32) -> (i32, i32) {
    %c0_i32 = arith.constant 0 : i32
    %c0_i32_0 = arith.constant 0 : i32
    return %arg0, %c0_i32 : i32, i32
  }
  func.func @transform_4(%arg0: i32) -> (i32, i32) {
    %c0_i32 = arith.constant 0 : i32
    %c0_i32_0 = arith.constant 0 : i32
    %c0_i32_1 = arith.constant 0 : i32
    return %c0_i32, %c0_i32_0 : i32, i32
  }
  func.func @transform_5(%arg0: i32) -> (i32, i32) {
    %c0_i32 = arith.constant 0 : i32
    %c0_i32_0 = arith.constant 0 : i32
    %c0_i32_1 = arith.constant 0 : i32
    return %c0_i32, %c0_i32_0 : i32, i32
  }
  func.func @transform_6(%arg0: i32) -> (i32, i32) {
    %c0_i32 = arith.constant 0 : i32
    %c0_i32_0 = arith.constant 0 : i32
    return %arg0, %c0_i32 : i32, i32
  }
  func.func @transform_7(%arg0: i32) -> (i32, i32) {
    %c0_i32 = arith.constant 0 : i32
    %c0_i32_0 = arith.constant 0 : i32
    return %arg0, %c0_i32 : i32, i32
  }
  func.func @transform_8(%arg0: i32) -> (i32, i32, i32) {
    %c0_i32 = arith.constant 0 : i32
    %c0_i32_0 = arith.constant 0 : i32
    %c0_i32_1 = arith.constant 0 : i32
    return %arg0, %c0_i32, %c0_i32_0 : i32, i32, i32
  }
}

</mosaic_0001>

<bundles_post_ra>
// kernel: tpu_custom_call.1
= control target key start
LH: loop header
LB: loop body
LE: loop exit
PB: predicated region body
PF: predicated region fallthrough
CT: control target
= control target key end

     0   :  { %vm48_vm0 = vcmask 261120   ;;  %v273_v1 = vmov 0.0   ;;  %vm274_vm1 = vmmov 0   ;;  %s371_s0 = inlined_call_operand.vmem [shape: bf16[8,32], index: 0, kind: input, shape index: {}]   ;;  %s372_s1 = inlined_call_operand.vmem [shape: bf16[8,32], index: 1, kind: input, shape index: {}]   ;;  %s373_s2 = inlined_call_operand.vmem [shape: bf16[8,32], index: 2, kind: input, shape index: {}]   ;;  %s374_s3 = inlined_call_operand.vmem [shape: bf16[8,32], index: 3, kind: input, shape index: {}]   ;;  %s375_s4 = inlined_call_operand.vmem [shape: bf16[4,32], index: 4, kind: input, shape index: {}]   ;;  %s376_s5 = inlined_call_operand.vmem [shape: f32[1,4], index: 5, kind: input, shape index: {}]   ;;  %s377_s6 = inlined_call_operand.vmem [shape: f32[8,1], index: 6, kind: input, shape index: {}]   ;;  %s378_s7 = inlined_call_operand.vmem [shape: f32[8,1], index: 7, kind: input, shape index: {}]   ;;  %s379_s8 = inlined_call_operand.hbm [shape: f32[1,8,128], index: 8, kind: output, shape index: {}]  }
   0x1   :  { %v35_v0 = vld [vmem:[%s375_s4] sm:$0x3]  ;;  %232 = vmatprep.subr.bf16.mxu0 %v273_v1  ;;  %234 = vmatprep.mubr.msk.bf16.mxu0 %vm274_vm1, %v273_v1 }
   0x2   :  { %v59_v2 = vsel %vm48_vm0, %v35_v0, 0 }
   0x3   :  { %13 = vsyncpa [#allocation3], 0  ;;  %233 = vmatpush3.bf16.xpose.msra.mxu0 %v59_v2  ;;  %238 = vmatprep.subr.bf16.mxu1 %v273_v1  ;;  %v31_v3 = vld [vmem:[%s371_s0] sm:$0xf]  ;;  %vm109_vm2 = vcmask 31744   ;;  %v113_v13 = vlaneseq  ;;  %v275_v54 = vmov 0  }
   0x4   :  { %239 = vmatpush3.bf16.xpose.msra.mxu1 %v59_v2  ;;  %240 = vmatprep.mubr.msk.bf16.mxu1 %vm274_vm1, %v273_v1  ;;  %v225_v5 = vld [vmem:[%s376_s5] ss:$0 sm:$0xff]  ;;  %v39_v31 = vunpack.c.l.bf16 %v31_v3  ;;  %vm196_vm6 = vcmask 7168  }
   0x5   :  { %v34_v12 = vld [vmem:[%s374_s3] sm:$0xf]  ;;  %v114_v14 = vand.u32 127, %v113_v13  ;;  %248 = vset.pattern.permute.xlu0 %v275_v54 }
   0x6   :  { %v42_v28 = vunpack.c.l.bf16 %v34_v12  ;;  %v32_v30 = vld [vmem:[%s372_s1] sm:$0xf] }
   0x7   :  { %v40_v32 = vunpack.c.l.bf16 %v32_v30  ;;  %v33_v33 = vld [vmem:[%s373_s2] sm:$0xf] }
   0x8   :  { %v184_v29 = vmul.f32 2.0, %v42_v28  ;;  %v41_v35 = vunpack.c.l.bf16 %v33_v33  ;;  %v38_v59 = vld [vmem:[%s378_s7] sm:$0xff]  ;;  %s276_s7 = smov [#allocation2]  }
   0x9   :  { %v43_v37 = vsub.f32 %v39_v31, %v40_v32  ;;  %v37_v63 = vld [vmem:[%s377_s6] sm:$0xff]  ;;  %s216_s15 = sshll.u32 %s276_s7, 4  ;;  %s217_s15 = int_to_ptr.vmem [resolvable:$true] %s216_s15 }
   0xa   :  { %235 = vmatmul.mubr.msk.bf16.vlgmr.msra.gmra.mrb[0].mxu0 %vm48_vm0, %v31_v3  ;;  %v185_v34 = vsub.f32 %v40_v32, %v184_v29  ;;  %v44_v38 = vsub.f32 %v39_v31, %v41_v35  ;;  %s249_s6 = scalar_lea.vmem %s217_s15, 128  ;;  %p254_p1 = scmp.lt.s32.totalorder %s217_s15, %s217_s15 }
   0xb   :  { %241 = vmatmul.mubr.msk.bf16.vlgmr.msra.gmra.mrb[0].mxu1 %vm48_vm0, %v34_v12  ;;  %v45_v40 = vmul.f32 %v43_v37, %v43_v37  ;;  %p250_p0 = scmp.ne.s32.totalorder %s217_s15, %s249_s6  ;;  %p255_p2 = scmp.lt.s32.totalorder %s249_s6, %s249_s6 }
   0xc   :  { %v186_v36 = vmul.f32 %v185_v34, %v40_v32  ;;  %v46_v41 = vmul.f32 %v44_v38, %v44_v38 }
   0xd   :  { %p256_p3 = por %p255_p2, %p254_p1 }
   0xe   :  { %v187_v39 = vsel %vm48_vm0, %v186_v36, 0.0  ;;  %v47_v42 = vsub.f32 %v45_v40, %v46_v41 }
   0xf   :  { %p257_p4 = pnand %p256_p3, %p250_p0 }
  0x10   :  { %v49_v53 = vsel %vm48_vm0, %v47_v42, 0.0 }
  0xdd   :  { %v95_v4 = vpop.f32.mrb[0].mxu0 }
  0xde   :  { %v101_v6 = vmul.f32 2.0, %v95_v4  ;;  %v236_v7 = vpop.f32.mrb[1].mxu0  ;;  %v172_v20 = vpop.f32.mrb[0].mxu1 }
  0xdf   :  { %v98_v8 = vpop.f32.mrb[2].mxu0  ;;  %v242_v21 = vpop.f32.mrb[1].mxu1  ;;  %v178_v44 = vmul.f32 2.0, %v172_v20 }
  0xe0   :  { %v237_v9 = vpop.f32.mrb[3].mxu0  ;;  %v108_v10 = vsub.f32 %v225_v5, %v101_v6  ;;  %v175_v22 = vpop.f32.mrb[2].mxu1 }
  0xe1   :  { %v243_v23 = vpop.f32.mrb[3].mxu1  ;;  %v179_v48 = vsub.f32 %v225_v5, %v178_v44 }
  0xe2   :  { %v110_v11 = vsel %vm109_vm2, %v108_v10, -inf }
  0xe3   :  { %111 = vmax.xlane.f32.xlu0 %v110_v11 }
 0x170   :  { %v112_v15 = vpop.xlane.xlu0 %111 }
 0x171   :  { %vm115_vm3 = vcmp.ge.f32.partialorder %v108_v10, %v112_v15 }
 0x172   :  { %v116_v16 = vsel %vm115_vm3, %v114_v14, 4 }
 0x173   :  { %v117_v17 = vsel %vm109_vm2, %v116_v16, 2147483647 }
 0x174   :  { %v119_v18 = vshra.s32 %v117_v17, 16  ;;  %v118_v24 = vand.u32 65535, %v117_v17 }
 0x176   :  { %v121_v19 = vcvt.s32.f32 %v119_v18  ;;  %v120_v26 = vcvt.s32.f32 %v118_v24 }
 0x178   :  { %122 = vmin.xlane.f32.xlu0 %v121_v19 }
 0x17c   :  { %188 = vadd.xlane.f32.xlu0 %v187_v39 }
 0x205   :  { %v123_v25 = vpop.xlane.xlu0 %122 }
 0x206   :  { %vm124_vm4 = vcmp.eq.f32.partialorder %v121_v19, %v123_v25  ;;  %v129_v43 = vcvt.f32.s32 %v123_v25 }
 0x207   :  { %v125_v27 = vsel %vm124_vm4, %v120_v26, inf }
 0x208   :  { %126 = vmin.xlane.f32.xlu1 %v125_v27  ;;  %v130_v46 = vshll.u32 %v129_v43, 16 }
 0x209   :  { %v189_v55 = vpop.xlane.xlu0 %188 }
 0x295   :  { %v127_v45 = vpop.xlane.xlu1 %126 }
 0x296   :  { %v128_v47 = vcvt.f32.s32 %v127_v45 }
 0x298   :  { %v131_v49 = vadd.s32 %v130_v46, %v128_v47 }
 0x29a   :  { %vm132_vm5 = vcmp.eq.s32.totalorder %v114_v14, %v131_v49 }
 0x29b   :  { %v226_v50 = vsel %vm132_vm5, 1.0, %v273_v1 }
 0x29c   :  { %v180_v51 = vmul.f32 %v226_v50, %v179_v48 }
 0x29e   :  { %v181_v52 = vsel %vm109_vm2, %v180_v51, 0.0 }
 0x29f   :  { %182 = vadd.xlane.f32.xlu1 %v181_v52 }
 0x2a3   :  { %50 = vadd.xlane.f32.xlu1 %v49_v53 }
 0x32c   :  { %v183_v56 = vpop.xlane.xlu1 %182 }
 0x32d   :  { %v190_v57 = vsub.f32 %v183_v56, %v189_v55 }
 0x32f   :  { %v191_v58 = vadd.f32 0.2, %v190_v57 }
 0x330   :  { %v51_v60 = vpop.xlane.xlu1 %50 }
 0x331   :  { %v192_v61 = vmax.f32 %v191_v58, 0.0  ;;  %v52_v62 = vadd.f32 0.2, %v51_v60 }
 0x333   :  { %v193_v0 = vmul.f32 %v192_v61, %v38_v59  ;;  %v53_v1 = vmax.f32 %v52_v62, 0.0 }
 0x335   :  { %v194_v2 = vmul.f32 0.5, %v193_v0  ;;  %v54_v3 = vmul.f32 %v53_v1, %v37_v63 }
 0x337   :  { %v195_v4 = vadd.f32 %v194_v2, %v54_v3 }
 0x339   :  { %v197_v5 = vsel %vm196_vm6, %v195_v4, 0.0 }
 0x33a   :  { %v198_v6 = vrot.slane %v197_v5, 4 }
 0x33c   :  { %v199_v7 = vadd.f32 %v198_v6, %v197_v5 }
 0x33e   :  { %v200_v8 = vrot.slane %v199_v7, 2 }
 0x340   :  { %v201_v9 = vadd.f32 %v200_v8, %v199_v7 }
 0x342   :  { %v202_v10 = vrot.slane %v201_v9, 1 }
 0x344   :  { %v203_v11 = vadd.f32 %v202_v10, %v201_v9 }
 0x346   :  { %206 = vperm.xlu0 %248, %v203_v11  }
 0x3c5   :  { %v207_v12 = vpop.permute.xlu0 %206 }
 0x3c6   :  { %209 = vst [vmem:[#allocation2] sm:$0xff] %v207_v12 }
 0x3c7   :  { %260 = shalt.err (!%p257_p4)
}
 0x3c8   :  { %s261_s18 = scalar_lea.hbm %s379_s8, 128 }
 0x3c9   :  { %p262_p5 = scmp.ne.s32.totalorder %s379_s8, %s261_s18  ;;  %p265_p6 = scmp.lt.u32.totalorder %s261_s18, %s379_s8 }
 0x3cb   :  { %p267_p7 = pnand %p265_p6, %p262_p5 }
 0x3cd   :  { %270 = shalt.err (!%p267_p7)
}
 0x3ce   :  { %219 = dma.vmem_to_hbm [thread:$0]  %s217_s15, 128, %s379_s8, [#allocation3]  }
 0x3cf   :  { %271 = dma.done.wait [#allocation3], 128  }
 0x3d0   :  { %272 = vsyncadd [#allocation3], 4294967168 }
 0x3d1   :  { %223 = vsyncpa [#allocation3], 1 }

</bundles_post_ra>
